<compile_context>
chip_gen: v5e
topology: v5e:2x2
jax: 0.10.0
libtpu: 0.0.40
codegen_flags: <defaults>
</compile_context>

<pallas_src>
import functools

import jax
import jax.numpy as jnp
from jax.experimental import pallas as pl
from jax.experimental.pallas import tpu as pltpu


def _wpool_kernel(h_ref, m_ref, w1_ref, b1_ref, w2_ref,
                  wp_ref, bp_ref, g_ref, beta_ref, out_ref, *, e_real):
    bt, S, H = h_ref.shape
    A = w1_ref.shape[1]
    Ep = out_ref.shape[1]

    h = h_ref[...]                      # [bt, S, H], native dtype (f32 or bf16)
    mask = m_ref[...]                   # [bt, S] f32 (1.0 keep / 0.0 masked)

    # --- Attention scoring MLP, stage 1: one dense [bt*S, H] @ [H, A] MXU matmul.
    # S is padded to the sublane pack in the wrapper, so this reshape is relayout-free.
    t = jnp.tanh(
        jnp.dot(h.reshape(bt * S, H), w1_ref[...],
                preferred_element_type=jnp.float32)
        + b1_ref[...])                                              # [bt*S, A] f32

    # --- Stage 2: Linear(A, 1) as a VPU multiply + lane reduce (w2 passed transposed).
    # The bias b2 is intentionally dropped: softmax is shift-invariant.
    w2row = w2_ref[...].reshape(1, 1, A)
    scores = jnp.sum(t.reshape(bt, S, A) * w2row, axis=-1)          # [bt, S] f32

    # --- masked_fill(attention_mask == 0, -1e9) + numerically stable softmax over seq.
    # Fully-masked rows degenerate to uniform weights (== mean pooling), matching PyTorch.
    scores = jnp.where(mask == 0.0, -1e9, scores)
    scores = scores - jnp.max(scores, axis=-1, keepdims=True)
    e = jnp.exp(scores)
    denom = jnp.sum(e, axis=-1, keepdims=True)
    r = pl.reciprocal(denom, approx=True)
    r = r * (2.0 - denom * r)           # one Newton step: ~1e-6 rel error, EUP-cheap
    p = e * r                                                       # [bt, S] f32

    # --- Weighted token sum on the MXU as an M=1 batched matvec.  p is cast explicitly to
    # h's dtype so a bf16 h is NOT silently promoted back to f32 in VMEM; f32 accumulation.
    # TODO(synk): verify in the bundle dump that this M=1 matmul hides under the h DMA; if
    # not (v5e), switch it to a VPU multiply + sublane reduce.
    weighted = jnp.einsum("bqs,bsh->bqh",
                          p.reshape(bt, 1, S).astype(h.dtype), h,
                          preferred_element_type=jnp.float32).reshape(bt, H)   # [bt, H] f32

    # --- Projection Linear(H, Ep).  wp is pre-cast to h's dtype; padded columns are zero.
    proj = jnp.dot(weighted.astype(wp_ref.dtype), wp_ref[...],
                   preferred_element_type=jnp.float32) + bp_ref[...]           # [bt, Ep] f32

    # TODO(synk): dropout is identity in eval mode; training-mode RNG dropout omitted.

    # --- LayerNorm over the REAL embedding width e_real (padded lanes are exact zeros).
    inv_e = 1.0 / float(e_real)
    mu = jnp.sum(proj, axis=-1, keepdims=True) * inv_e
    diff = proj - mu
    if Ep != e_real:
        cmask = (jax.lax.broadcasted_iota(jnp.int32, (1, Ep), 1) < e_real
                 ).astype(jnp.float32)
        diff = diff * cmask             # zero out padded lanes before the variance sum
    var = jnp.sum(diff * diff, axis=-1, keepdims=True) * inv_e
    normed = diff * jax.lax.rsqrt(var + 1e-5)
    out_ref[...] = (normed * g_ref[...] + beta_ref[...]).astype(out_ref.dtype)  # [bt, Ep]


def _vmem_budget():
    """Generation-aware VMEM sizing: v7x has 64 MiB/TC, v5e/v6e have 128 MiB."""
    cap = 64 << 20                                   # conservative fallback (v7x)
    try:
        cap = int(getattr(pltpu.get_tpu_info(), "vmem_capacity_bytes", cap))
    except Exception:
        pass
    limit = int(cap * 3 // 4)                        # scoped-VMEM limit for the compiler
    budget = int(limit * 17 // 20)                   # tile-sizing budget below the limit
    return budget, limit


def _choose_bt(B, S, H, A, E, h_itemsize, out_itemsize, budget_bytes):
    """Pick the batch tile.

    Counts the double-buffered hidden/mask/output blocks, the f32 tanh intermediate,
    the weighted-sum operands, small temporaries, and (conservatively, double-counted)
    parameter blocks.  Never rounds bt UP past the budget-derived value except for the
    hardware-required multiple-of-8 floor on partial batch tiles.
    """
    param_bytes = 2 * (H * A * h_itemsize + H * E * h_itemsize + (2 * A + 3 * E) * 4)
    per_row = (
        2 * S * H * h_itemsize          # double-buffered hidden tile
        + 2 * S * 4                     # double-buffered mask block (f32)
        + 2 * E * out_itemsize          # double-buffered output slab
        + 2 * S * A * 4                 # f32 tanh intermediate t (+ reshape headroom)
        + S * H * h_itemsize            # weighted-sum operand copy
        + (4 * S + 2 * H + 6 * E) * 4   # scores / p / weighted / proj / LN temporaries
    )
    avail = max(budget_bytes - param_bytes, per_row)
    bt = max(1, int(avail // per_row))
    bt = min(bt, B)
    # Enough grid steps for dual-TC (v7x) sharding AND DMA/compute overlap.
    if B >= 64:
        bt = min(bt, max(1, B // 8))
    elif B >= 16:
        bt = min(bt, max(1, B // 4))
    # Partial batch tiles must be sublane-friendly for the 2-D mask/output blocks:
    # round DOWN to a multiple of 8 (never above the budget value) — except the corner
    # case bt < 8 < B, where 8 is the hardware floor.
    # TODO(synk): for very large S*H add an S grid axis (flash-style online softmax).
    if bt < B:
        bt = (bt // 8) * 8 if bt >= 8 else min(8, B)
    return max(1, int(bt))


def weighted_pooling_text_encoder(hidden_states, attention_mask, params, *,
                                  bt=None, vmem_limit_bytes=None):
    """hidden_states: [B, S, H] (f32 or bf16), attention_mask: [B, S] (1/0).
    Returns text embeddings [B, E] in hidden_states' dtype."""
    B, S, H = hidden_states.shape
    A = params["w1"].shape[1]           # attention-MLP hidden width (128)
    E = params["wp"].shape[1]           # embedding_dim
    h_dtype = hidden_states.dtype
    out_dtype = h_dtype

    budget, limit = _vmem_budget()
    if vmem_limit_bytes is None:
        vmem_limit_bytes = limit

    # Stream h in its native dtype (do NOT upcast bf16 -> f32 here: the kernel is HBM-bound
    # on this stream).  Only the tiny mask is converted.
    h = hidden_states
    mask = attention_mask.astype(jnp.float32)

    # Keep the in-kernel [bt,S,H] -> [bt*S,H] reshape relayout-free: S must be a multiple of
    # the sublane pack for h's dtype.  Standard sequence lengths (128/512) already are, so
    # this pad is normally a no-op; padded tokens carry mask=0 -> ~zero softmax weight.
    sub = {4: 8, 2: 16, 1: 32}.get(jnp.dtype(h_dtype).itemsize, 8)
    S_p = int(pl.cdiv(S, sub)) * sub
    if S_p != S:
        h = jnp.pad(h, ((0, 0), (0, S_p - S), (0, 0)))
        mask = jnp.pad(mask, ((0, 0), (0, S_p - S)))

    # Lane-dense output: pad the (tiny) projection / LayerNorm parameters to a multiple of
    # 128 columns; LayerNorm statistics in the kernel use the real E.
    Ep = int(pl.cdiv(E, 128)) * 128
    wp = params["wp"].astype(h_dtype)
    bp = params["bp"].reshape(1, E).astype(jnp.float32)
    gamma = params["gamma"].reshape(1, E).astype(jnp.float32)
    beta = params["beta"].reshape(1, E).astype(jnp.float32)
    if Ep != E:
        wp = jnp.pad(wp, ((0, 0), (0, Ep - E)))
        bp = jnp.pad(bp, ((0, 0), (0, Ep - E)))
        gamma = jnp.pad(gamma, ((0, 0), (0, Ep - E)))
        beta = jnp.pad(beta, ((0, 0), (0, Ep - E)))

    w1 = params["w1"].astype(h_dtype)                      # MXU weight in h's dtype
    b1 = params["b1"].reshape(1, A).astype(jnp.float32)
    w2t = params["w2"].reshape(1, A).astype(jnp.float32)   # transposed for mul + lane reduce
    # params["b2"] is intentionally NOT passed: softmax shift-invariance makes it a no-op.

    if bt is None:
        bt = _choose_bt(B, S_p, H, A, Ep, jnp.dtype(h_dtype).itemsize,
                        jnp.dtype(out_dtype).itemsize, budget)
    bt = max(1, min(int(bt), B))

    # No batch padding of the big h tensor: the last batch tile may be partial.  Rows are
    # independent, so garbage read in the OOB tail only feeds OOB output rows whose writes
    # Pallas drops.
    grid = (int(pl.cdiv(B, bt)),)

    kernel = functools.partial(_wpool_kernel, e_real=E)

    def build(single_buffer_params):
        def const(shape):
            n = len(shape)
            kw = {}
            if single_buffer_params:
                kw["pipeline_mode"] = pl.Buffered(1)       # grid-invariant: 1 buffer is enough
            return pl.BlockSpec(shape, lambda b, _n=n: (0,) * _n, **kw)

        grid_spec = pltpu.PrefetchScalarGridSpec(
            num_scalar_prefetch=0,
            grid=grid,
            in_specs=[
                pl.BlockSpec((bt, S_p, H), lambda b: (b, 0, 0)),   # hidden_states tile
                pl.BlockSpec((bt, S_p), lambda b: (b, 0)),         # attention mask tile
                const((H, A)),                                     # w1
                const((1, A)),                                     # b1
                const((1, A)),                                     # w2 (transposed)
                const((H, Ep)),                                    # wp (lane-padded)
                const((1, Ep)),                                    # bp
                const((1, Ep)),                                    # layernorm gamma
                const((1, Ep)),                                    # layernorm beta
            ],
            out_specs=pl.BlockSpec((bt, Ep), lambda b: (b, 0)),    # lane-dense output slab
        )
        return pl.pallas_call(
            kernel,
            out_shape=jax.ShapeDtypeStruct((B, Ep), out_dtype),
            grid_spec=grid_spec,
            compiler_params=pltpu.CompilerParams(
                dimension_semantics=("parallel",),
                vmem_limit_bytes=int(vmem_limit_bytes)),
        )

    args = (h, mask, w1, b1, w2t, wp, bp, gamma, beta)
    try:
        out = build(True)(*args)
    except Exception:
        # pipeline_mode=Buffered(1) unsupported on this JAX/Mosaic version: fall back to
        # default double-buffering of the parameter blocks.
        out = build(False)(*args)

    return out[:, :E] if Ep != E else out


def _reference(hidden_states, attention_mask, params):
    with jax.default_matmul_precision("highest"):
        t = jnp.tanh(hidden_states @ params["w1"] + params["b1"])          # [B,S,128]
        s = (t @ params["w2"])[..., 0] + params["b2"][0, 0]                # [B,S]
        s = jnp.where(attention_mask == 0, -1e9, s)
        p = jax.nn.softmax(s, axis=1)
        weighted = jnp.einsum("bs,bsh->bh", p, hidden_states)
        proj = weighted @ params["wp"] + params["bp"]
        mu = proj.mean(-1, keepdims=True)
        var = ((proj - mu) ** 2).mean(-1, keepdims=True)
        return (proj - mu) / jnp.sqrt(var + 1e-5) * params["gamma"] + params["beta"]


if __name__ == "__main__":
    # Small shapes consistent with the module's forward:
    # batch B=2, seq S=8, transformer hidden H=32, embedding_dim E=32, attn MLP hidden A=128.
    B, S, H, E, A = 2, 8, 32, 32, 128

    key = jax.random.PRNGKey(0)
    keys = jax.random.split(key, 8)

    hidden_states = jax.random.normal(keys[0], (B, S, H), dtype=jnp.float32)
    # Mask: batch 0 fully valid, batch 1 with last 3 tokens padded.
    attention_mask = jnp.array([[1] * S, [1] * (S - 3) + [0] * 3], dtype=jnp.int32)

    params = {
        "w1": jax.random.normal(keys[1], (H, A), dtype=jnp.float32) * 0.05,
        "b1": jnp.zeros((1, A), dtype=jnp.float32),
        "w2": jax.random.normal(keys[2], (A, 1), dtype=jnp.float32) * 0.05,
        # Nonzero b2: the kernel drops it via softmax shift-invariance; reference keeps it.
        "b2": jnp.full((1, 1), 0.3, dtype=jnp.float32),
        "wp": jax.random.normal(keys[3], (H, E), dtype=jnp.float32) * 0.05,
        "bp": jax.random.normal(keys[4], (1, E), dtype=jnp.float32) * 0.01,
        "gamma": jnp.ones((1, E), dtype=jnp.float32),
        "beta": jnp.zeros((1, E), dtype=jnp.float32),
    }

    ref = _reference(hidden_states, attention_mask, params)

    # f32 path.
    out = weighted_pooling_text_encoder(hidden_states, attention_mask, params)
    out = jax.block_until_ready(out)
    assert out.shape == (B, E)
    assert jnp.allclose(out, ref, atol=5e-3, rtol=5e-3), "f32 mismatch vs pure-JAX reference"

    # bf16 streaming path (MXU inputs in bf16, f32 accumulation + f32 elementwise math).
    out_bf16 = weighted_pooling_text_encoder(
        hidden_states.astype(jnp.bfloat16), attention_mask, params)
    out_bf16 = jax.block_until_ready(out_bf16)
    assert out_bf16.shape == (B, E)
    assert bool(jnp.all(jnp.isfinite(out_bf16.astype(jnp.float32))))
    assert jnp.allclose(out_bf16.astype(jnp.float32), ref, atol=1.5e-1), \
        "bf16 mismatch vs pure-JAX reference"

    print("KERNEL_OK")
</pallas_src>

<mosaic_0001>
module attributes {stable_mosaic.version = 11 : i64} {
  func.func @_wpool_kernel(%arg0: i32, %arg1: memref<2x8x32xf32, #tpu.memory_space<vmem>>, %arg2: memref<2x8xf32, #tpu.memory_space<vmem>>, %arg3: memref<32x128xf32, #tpu.memory_space<vmem>>, %arg4: memref<1x128xf32, #tpu.memory_space<vmem>>, %arg5: memref<1x128xf32, #tpu.memory_space<vmem>>, %arg6: memref<32x128xf32, #tpu.memory_space<vmem>>, %arg7: memref<1x128xf32, #tpu.memory_space<vmem>>, %arg8: memref<1x128xf32, #tpu.memory_space<vmem>>, %arg9: memref<1x128xf32, #tpu.memory_space<vmem>>, %arg10: memref<2x128xf32, #tpu.memory_space<vmem>>) attributes {dimension_semantics = [#tpu.dimension_semantics<parallel>], iteration_bounds = array<i64: 1>, scalar_prefetch = 0 : i64, scratch_operands = 0 : i64, tpu.core_type = #tpu.core_type<tc>, window_params = [{transform_indices = @transform_0, window_bounds = array<i64: 2, 8, 32>}, {transform_indices = @transform_1, window_bounds = array<i64: 2, 8>}, {pipeline_mode = #tpu.pipeline_mode<synchronous>, transform_indices = @transform_2, window_bounds = array<i64: 32, 128>}, {pipeline_mode = #tpu.pipeline_mode<synchronous>, transform_indices = @transform_3, window_bounds = array<i64: 1, 128>}, {pipeline_mode = #tpu.pipeline_mode<synchronous>, transform_indices = @transform_4, window_bounds = array<i64: 1, 128>}, {pipeline_mode = #tpu.pipeline_mode<synchronous>, transform_indices = @transform_5, window_bounds = array<i64: 32, 128>}, {pipeline_mode = #tpu.pipeline_mode<synchronous>, transform_indices = @transform_6, window_bounds = array<i64: 1, 128>}, {pipeline_mode = #tpu.pipeline_mode<synchronous>, transform_indices = @transform_7, window_bounds = array<i64: 1, 128>}, {pipeline_mode = #tpu.pipeline_mode<synchronous>, transform_indices = @transform_8, window_bounds = array<i64: 1, 128>}, {transform_indices = @transform_9, window_bounds = array<i64: 2, 128>}]} {
    %c0 = arith.constant 0 : index
    %c0_0 = arith.constant 0 : index
    %c0_1 = arith.constant 0 : index
    %0 = vector.load %arg1[%c0, %c0_0, %c0_1] : memref<2x8x32xf32, #tpu.memory_space<vmem>>, vector<2x8x32xf32>
    %c0_2 = arith.constant 0 : index
    %c0_3 = arith.constant 0 : index
    %1 = vector.load %arg2[%c0_2, %c0_3] : memref<2x8xf32, #tpu.memory_space<vmem>>, vector<2x8xf32>
    %2 = vector.shape_cast %0 : vector<2x8x32xf32> to vector<16x32xf32>
    %c0_4 = arith.constant 0 : index
    %c0_5 = arith.constant 0 : index
    %3 = vector.load %arg3[%c0_4, %c0_5] : memref<32x128xf32, #tpu.memory_space<vmem>>, vector<32x128xf32>
    %cst = arith.constant dense<0.000000e+00> : vector<16x128xf32>
    %4 = tpu.matmul %2, %3, %cst {dimension_numbers = #tpu.dot_dimension_numbers<[1], [0], [0], [1], [0, 0, 1, 1], [], []>} : vector<16x32xf32>, vector<32x128xf32>, vector<16x128xf32> -> vector<16x128xf32>
    %c0_6 = arith.constant 0 : index
    %c0_7 = arith.constant 0 : index
    %5 = vector.load %arg4[%c0_6, %c0_7] : memref<1x128xf32, #tpu.memory_space<vmem>>, vector<1x128xf32>
    %6 = vector.broadcast %5 : vector<1x128xf32> to vector<16x128xf32>
    %7 = arith.addf %4, %6 : vector<16x128xf32>
    %8 = math.tanh %7 : vector<16x128xf32>
    %c0_8 = arith.constant 0 : index
    %c0_9 = arith.constant 0 : index
    %9 = vector.load %arg5[%c0_8, %c0_9] : memref<1x128xf32, #tpu.memory_space<vmem>>, vector<1x128xf32>
    %10 = vector.shape_cast %9 : vector<1x128xf32> to vector<1x1x128xf32>
    %11 = vector.shape_cast %8 : vector<16x128xf32> to vector<2x8x128xf32>
    %12 = vector.broadcast %10 : vector<1x1x128xf32> to vector<2x8x128xf32>
    %13 = arith.mulf %11, %12 : vector<2x8x128xf32>
    %cst_10 = arith.constant dense<0.000000e+00> : vector<2x8xf32>
    %14 = vector.multi_reduction <add>, %13, %cst_10 [2] : vector<2x8x128xf32> to vector<2x8xf32>
    %cst_11 = arith.constant 0.000000e+00 : f32
    %15 = vector.broadcast %cst_11 : f32 to vector<2x8xf32>
    %16 = arith.cmpf oeq, %1, %15 : vector<2x8xf32>
    %cst_12 = arith.constant -1.000000e+09 : f32
    %17 = vector.broadcast %cst_12 : f32 to vector<2x8xf32>
    %18 = arith.select %16, %17, %14 : vector<2x8xi1>, vector<2x8xf32>
    %cst_13 = arith.constant dense<0xFF800000> : vector<2xf32>
    %19 = vector.multi_reduction <maximumf>, %18, %cst_13 [1] : vector<2x8xf32> to vector<2xf32>
    %20 = vector.shape_cast %19 : vector<2xf32> to vector<2x1xf32>
    %21 = vector.broadcast %20 : vector<2x1xf32> to vector<2x8xf32>
    %22 = arith.subf %18, %21 : vector<2x8xf32>
    %23 = math.exp %22 : vector<2x8xf32>
    %cst_14 = arith.constant dense<0.000000e+00> : vector<2xf32>
    %24 = vector.multi_reduction <add>, %23, %cst_14 [1] : vector<2x8xf32> to vector<2xf32>
    %25 = vector.shape_cast %24 : vector<2xf32> to vector<2x1xf32>
    %26 = tpu.reciprocal %25 {approx = true} : vector<2x1xf32> -> vector<2x1xf32>
    %27 = arith.mulf %25, %26 : vector<2x1xf32>
    %cst_15 = arith.constant 2.000000e+00 : f32
    %28 = vector.broadcast %cst_15 : f32 to vector<2x1xf32>
    %29 = arith.subf %28, %27 : vector<2x1xf32>
    %30 = arith.mulf %26, %29 : vector<2x1xf32>
    %31 = vector.broadcast %30 : vector<2x1xf32> to vector<2x8xf32>
    %32 = arith.mulf %23, %31 : vector<2x8xf32>
    %33 = vector.shape_cast %32 : vector<2x8xf32> to vector<2x1x8xf32>
    "tpu.trace_start"() <{level = 10 : i32, message = "bqs,bsh->bqh"}> : () -> ()
    %cst_16 = arith.constant dense<0.000000e+00> : vector<2x1x32xf32>
    %34 = tpu.matmul %33, %0, %cst_16 {dimension_numbers = #tpu.dot_dimension_numbers<[2], [1], [1], [2], [0, 0, 0, 1, 1, 2], [0], [0]>} : vector<2x1x8xf32>, vector<2x8x32xf32>, vector<2x1x32xf32> -> vector<2x1x32xf32>
    "tpu.trace_stop"() : () -> ()
    %35 = vector.shape_cast %34 : vector<2x1x32xf32> to vector<2x32xf32>
    %c0_17 = arith.constant 0 : index
    %c0_18 = arith.constant 0 : index
    %36 = vector.load %arg6[%c0_17, %c0_18] : memref<32x128xf32, #tpu.memory_space<vmem>>, vector<32x128xf32>
    %cst_19 = arith.constant dense<0.000000e+00> : vector<2x128xf32>
    %37 = tpu.matmul %35, %36, %cst_19 {dimension_numbers = #tpu.dot_dimension_numbers<[1], [0], [0], [1], [0, 0, 1, 1], [], []>} : vector<2x32xf32>, vector<32x128xf32>, vector<2x128xf32> -> vector<2x128xf32>
    %c0_20 = arith.constant 0 : index
    %c0_21 = arith.constant 0 : index
    %38 = vector.load %arg7[%c0_20, %c0_21] : memref<1x128xf32, #tpu.memory_space<vmem>>, vector<1x128xf32>
    %39 = vector.broadcast %38 : vector<1x128xf32> to vector<2x128xf32>
    %40 = arith.addf %37, %39 : vector<2x128xf32>
    %cst_22 = arith.constant dense<0.000000e+00> : vector<2xf32>
    %41 = vector.multi_reduction <add>, %40, %cst_22 [1] : vector<2x128xf32> to vector<2xf32>
    %42 = vector.shape_cast %41 : vector<2xf32> to vector<2x1xf32>
    %cst_23 = arith.constant 3.125000e-02 : f32
    %43 = vector.broadcast %cst_23 : f32 to vector<2x1xf32>
    %44 = arith.mulf %42, %43 : vector<2x1xf32>
    %45 = vector.broadcast %44 : vector<2x1xf32> to vector<2x128xf32>
    %46 = arith.subf %40, %45 : vector<2x128xf32>
    %47 = tpu.iota {dimensions = array<i32: 1>} : vector<1x128xi32>
    %c32_i32 = arith.constant 32 : i32
    %48 = vector.broadcast %c32_i32 : i32 to vector<1x128xi32>
    %49 = arith.cmpi slt, %47, %48 : vector<1x128xi32>
    %50 = arith.extui %49 : vector<1x128xi1> to vector<1x128xi32>
    %51 = arith.sitofp %50 : vector<1x128xi32> to vector<1x128xf32>
    %52 = vector.broadcast %51 : vector<1x128xf32> to vector<2x128xf32>
    %53 = arith.mulf %46, %52 : vector<2x128xf32>
    %54 = arith.mulf %53, %53 : vector<2x128xf32>
    %cst_24 = arith.constant dense<0.000000e+00> : vector<2xf32>
    %55 = vector.multi_reduction <add>, %54, %cst_24 [1] : vector<2x128xf32> to vector<2xf32>
    %56 = vector.shape_cast %55 : vector<2xf32> to vector<2x1xf32>
    %cst_25 = arith.constant 3.125000e-02 : f32
    %57 = vector.broadcast %cst_25 : f32 to vector<2x1xf32>
    %58 = arith.mulf %56, %57 : vector<2x1xf32>
    %cst_26 = arith.constant 9.99999974E-6 : f32
    %59 = vector.broadcast %cst_26 : f32 to vector<2x1xf32>
    %60 = arith.addf %58, %59 : vector<2x1xf32>
    %61 = math.rsqrt %60 : vector<2x1xf32>
    %62 = vector.broadcast %61 : vector<2x1xf32> to vector<2x128xf32>
    %63 = arith.mulf %53, %62 : vector<2x128xf32>
    %c0_27 = arith.constant 0 : index
    %c0_28 = arith.constant 0 : index
    %64 = vector.load %arg8[%c0_27, %c0_28] : memref<1x128xf32, #tpu.memory_space<vmem>>, vector<1x128xf32>
    %65 = vector.broadcast %64 : vector<1x128xf32> to vector<2x128xf32>
    %66 = arith.mulf %63, %65 : vector<2x128xf32>
    %c0_29 = arith.constant 0 : index
    %c0_30 = arith.constant 0 : index
    %67 = vector.load %arg9[%c0_29, %c0_30] : memref<1x128xf32, #tpu.memory_space<vmem>>, vector<1x128xf32>
    %68 = vector.broadcast %67 : vector<1x128xf32> to vector<2x128xf32>
    %69 = arith.addf %66, %68 : vector<2x128xf32>
    %c0_31 = arith.constant 0 : index
    %c0_32 = arith.constant 0 : index
    %70 = vector.load %arg10[%c0_31, %c0_32] : memref<2x128xf32, #tpu.memory_space<vmem>>, vector<2x128xf32>
    tpu.vector_store %arg10[%c0_31, %c0_32], %69 {strides = array<i32>} : memref<2x128xf32, #tpu.memory_space<vmem>>, vector<2x128xf32>,
    return
  }
  func.func @transform_0(%arg0: i32) -> (i32, i32, i32) {
    %c0_i32 = arith.constant 0 : i32
    %c0_i32_0 = arith.constant 0 : i32
    %c0_i32_1 = arith.constant 0 : i32
    return %arg0, %c0_i32, %c0_i32_0 : i32, i32, i32
  }
  func.func @transform_1(%arg0: i32) -> (i32, i32) {
    %c0_i32 = arith.constant 0 : i32
    %c0_i32_0 = arith.constant 0 : i32
    return %arg0, %c0_i32 : i32, i32
  }
  func.func @transform_2(%arg0: i32) -> (i32, i32) {
    %c0_i32 = arith.constant 0 : i32
    %c0_i32_0 = arith.constant 0 : i32
    %c0_i32_1 = arith.constant 0 : i32
    return %c0_i32, %c0_i32_0 : i32, i32
  }
  func.func @transform_3(%arg0: i32) -> (i32, i32) {
    %c0_i32 = arith.constant 0 : i32
    %c0_i32_0 = arith.constant 0 : i32
    %c0_i32_1 = arith.constant 0 : i32
    return %c0_i32, %c0_i32_0 : i32, i32
  }
  func.func @transform_4(%arg0: i32) -> (i32, i32) {
    %c0_i32 = arith.constant 0 : i32
    %c0_i32_0 = arith.constant 0 : i32
    %c0_i32_1 = arith.constant 0 : i32
    return %c0_i32, %c0_i32_0 : i32, i32
  }
  func.func @transform_5(%arg0: i32) -> (i32, i32) {
    %c0_i32 = arith.constant 0 : i32
    %c0_i32_0 = arith.constant 0 : i32
    %c0_i32_1 = arith.constant 0 : i32
    return %c0_i32, %c0_i32_0 : i32, i32
  }
  func.func @transform_6(%arg0: i32) -> (i32, i32) {
    %c0_i32 = arith.constant 0 : i32
    %c0_i32_0 = arith.constant 0 : i32
    %c0_i32_1 = arith.constant 0 : i32
    return %c0_i32, %c0_i32_0 : i32, i32
  }
  func.func @transform_7(%arg0: i32) -> (i32, i32) {
    %c0_i32 = arith.constant 0 : i32
    %c0_i32_0 = arith.constant 0 : i32
    %c0_i32_1 = arith.constant 0 : i32
    return %c0_i32, %c0_i32_0 : i32, i32
  }
  func.func @transform_8(%arg0: i32) -> (i32, i32) {
    %c0_i32 = arith.constant 0 : i32
    %c0_i32_0 = arith.constant 0 : i32
    %c0_i32_1 = arith.constant 0 : i32
    return %c0_i32, %c0_i32_0 : i32, i32
  }
  func.func @transform_9(%arg0: i32) -> (i32, i32) {
    %c0_i32 = arith.constant 0 : i32
    %c0_i32_0 = arith.constant 0 : i32
    return %arg0, %c0_i32 : i32, i32
  }
}

module attributes {stable_mosaic.version = 11 : i64} {
  func.func @_wpool_kernel(%arg0: i32, %arg1: memref<2x8x32xf32, #tpu.memory_space<vmem>>, %arg2: memref<2x8xf32, #tpu.memory_space<vmem>>, %arg3: memref<32x128xf32, #tpu.memory_space<vmem>>, %arg4: memref<1x128xf32, #tpu.memory_space<vmem>>, %arg5: memref<1x128xf32, #tpu.memory_space<vmem>>, %arg6: memref<32x128xf32, #tpu.memory_space<vmem>>, %arg7: memref<1x128xf32, #tpu.memory_space<vmem>>, %arg8: memref<1x128xf32, #tpu.memory_space<vmem>>, %arg9: memref<1x128xf32, #tpu.memory_space<vmem>>, %arg10: memref<2x128xf32, #tpu.memory_space<vmem>>) attributes {dimension_semantics = [#tpu.dimension_semantics<parallel>], iteration_bounds = array<i64: 1>, scalar_prefetch = 0 : i64, scratch_operands = 0 : i64, tpu.core_type = #tpu.core_type<tc>, window_params = [{transform_indices = @transform_0, window_bounds = array<i64: 2, 8, 32>}, {transform_indices = @transform_1, window_bounds = array<i64: 2, 8>}, {pipeline_mode = #tpu.pipeline_mode<synchronous>, transform_indices = @transform_2, window_bounds = array<i64: 32, 128>}, {pipeline_mode = #tpu.pipeline_mode<synchronous>, transform_indices = @transform_3, window_bounds = array<i64: 1, 128>}, {pipeline_mode = #tpu.pipeline_mode<synchronous>, transform_indices = @transform_4, window_bounds = array<i64: 1, 128>}, {pipeline_mode = #tpu.pipeline_mode<synchronous>, transform_indices = @transform_5, window_bounds = array<i64: 32, 128>}, {pipeline_mode = #tpu.pipeline_mode<synchronous>, transform_indices = @transform_6, window_bounds = array<i64: 1, 128>}, {pipeline_mode = #tpu.pipeline_mode<synchronous>, transform_indices = @transform_7, window_bounds = array<i64: 1, 128>}, {pipeline_mode = #tpu.pipeline_mode<synchronous>, transform_indices = @transform_8, window_bounds = array<i64: 1, 128>}, {transform_indices = @transform_9, window_bounds = array<i64: 2, 128>}]} {
    %c0 = arith.constant 0 : index
    %c0_0 = arith.constant 0 : index
    %c0_1 = arith.constant 0 : index
    %0 = vector.load %arg1[%c0, %c0_0, %c0_1] : memref<2x8x32xf32, #tpu.memory_space<vmem>>, vector<2x8x32xf32>
    %c0_2 = arith.constant 0 : index
    %c0_3 = arith.constant 0 : index
    %1 = vector.load %arg2[%c0_2, %c0_3] : memref<2x8xf32, #tpu.memory_space<vmem>>, vector<2x8xf32>
    %2 = vector.shape_cast %0 : vector<2x8x32xf32> to vector<16x32xf32>
    %c0_4 = arith.constant 0 : index
    %c0_5 = arith.constant 0 : index
    %3 = vector.load %arg3[%c0_4, %c0_5] : memref<32x128xf32, #tpu.memory_space<vmem>>, vector<32x128xf32>
    %cst = arith.constant dense<0.000000e+00> : vector<16x128xf32>
    %4 = tpu.matmul %2, %3, %cst {dimension_numbers = #tpu.dot_dimension_numbers<[1], [0], [0], [1], [0, 0, 1, 1], [], []>} : vector<16x32xf32>, vector<32x128xf32>, vector<16x128xf32> -> vector<16x128xf32>
    %c0_6 = arith.constant 0 : index
    %c0_7 = arith.constant 0 : index
    %5 = vector.load %arg4[%c0_6, %c0_7] : memref<1x128xf32, #tpu.memory_space<vmem>>, vector<1x128xf32>
    %6 = vector.broadcast %5 : vector<1x128xf32> to vector<16x128xf32>
    %7 = arith.addf %4, %6 : vector<16x128xf32>
    %8 = math.tanh %7 : vector<16x128xf32>
    %c0_8 = arith.constant 0 : index
    %c0_9 = arith.constant 0 : index
    %9 = vector.load %arg5[%c0_8, %c0_9] : memref<1x128xf32, #tpu.memory_space<vmem>>, vector<1x128xf32>
    %10 = vector.shape_cast %9 : vector<1x128xf32> to vector<1x1x128xf32>
    %11 = vector.shape_cast %8 : vector<16x128xf32> to vector<2x8x128xf32>
    %12 = vector.broadcast %10 : vector<1x1x128xf32> to vector<2x8x128xf32>
    %13 = arith.mulf %11, %12 : vector<2x8x128xf32>
    %cst_10 = arith.constant dense<0.000000e+00> : vector<2x8xf32>
    %14 = vector.multi_reduction <add>, %13, %cst_10 [2] : vector<2x8x128xf32> to vector<2x8xf32>
    %cst_11 = arith.constant 0.000000e+00 : f32
    %15 = vector.broadcast %cst_11 : f32 to vector<2x8xf32>
    %16 = arith.cmpf oeq, %1, %15 : vector<2x8xf32>
    %cst_12 = arith.constant -1.000000e+09 : f32
    %17 = vector.broadcast %cst_12 : f32 to vector<2x8xf32>
    %18 = arith.select %16, %17, %14 : vector<2x8xi1>, vector<2x8xf32>
    %cst_13 = arith.constant dense<0xFF800000> : vector<2xf32>
    %19 = vector.multi_reduction <maximumf>, %18, %cst_13 [1] : vector<2x8xf32> to vector<2xf32>
    %20 = vector.shape_cast %19 : vector<2xf32> to vector<2x1xf32>
    %21 = vector.broadcast %20 : vector<2x1xf32> to vector<2x8xf32>
    %22 = arith.subf %18, %21 : vector<2x8xf32>
    %23 = math.exp %22 : vector<2x8xf32>
    %cst_14 = arith.constant dense<0.000000e+00> : vector<2xf32>
    %24 = vector.multi_reduction <add>, %23, %cst_14 [1] : vector<2x8xf32> to vector<2xf32>
    %25 = vector.shape_cast %24 : vector<2xf32> to vector<2x1xf32>
    %26 = tpu.reciprocal %25 {approx = true} : vector<2x1xf32> -> vector<2x1xf32>
    %27 = arith.mulf %25, %26 : vector<2x1xf32>
    %cst_15 = arith.constant 2.000000e+00 : f32
    %28 = vector.broadcast %cst_15 : f32 to vector<2x1xf32>
    %29 = arith.subf %28, %27 : vector<2x1xf32>
    %30 = arith.mulf %26, %29 : vector<2x1xf32>
    %31 = vector.broadcast %30 : vector<2x1xf32> to vector<2x8xf32>
    %32 = arith.mulf %23, %31 : vector<2x8xf32>
    %33 = vector.shape_cast %32 : vector<2x8xf32> to vector<2x1x8xf32>
    "tpu.trace_start"() <{level = 10 : i32, message = "bqs,bsh->bqh"}> : () -> ()
    %cst_16 = arith.constant dense<0.000000e+00> : vector<2x1x32xf32>
    %34 = tpu.matmul %33, %0, %cst_16 {dimension_numbers = #tpu.dot_dimension_numbers<[2], [1], [1], [2], [0, 0, 0, 1, 1, 2], [0], [0]>} : vector<2x1x8xf32>, vector<2x8x32xf32>, vector<2x1x32xf32> -> vector<2x1x32xf32>
    "tpu.trace_stop"() : () -> ()
    %35 = vector.shape_cast %34 : vector<2x1x32xf32> to vector<2x32xf32>
    %c0_17 = arith.constant 0 : index
    %c0_18 = arith.constant 0 : index
    %36 = vector.load %arg6[%c0_17, %c0_18] : memref<32x128xf32, #tpu.memory_space<vmem>>, vector<32x128xf32>
    %cst_19 = arith.constant dense<0.000000e+00> : vector<2x128xf32>
    %37 = tpu.matmul %35, %36, %cst_19 {dimension_numbers = #tpu.dot_dimension_numbers<[1], [0], [0], [1], [0, 0, 1, 1], [], []>} : vector<2x32xf32>, vector<32x128xf32>, vector<2x128xf32> -> vector<2x128xf32>
    %c0_20 = arith.constant 0 : index
    %c0_21 = arith.constant 0 : index
    %38 = vector.load %arg7[%c0_20, %c0_21] : memref<1x128xf32, #tpu.memory_space<vmem>>, vector<1x128xf32>
    %39 = vector.broadcast %38 : vector<1x128xf32> to vector<2x128xf32>
    %40 = arith.addf %37, %39 : vector<2x128xf32>
    %cst_22 = arith.constant dense<0.000000e+00> : vector<2xf32>
    %41 = vector.multi_reduction <add>, %40, %cst_22 [1] : vector<2x128xf32> to vector<2xf32>
    %42 = vector.shape_cast %41 : vector<2xf32> to vector<2x1xf32>
    %cst_23 = arith.constant 3.125000e-02 : f32
    %43 = vector.broadcast %cst_23 : f32 to vector<2x1xf32>
    %44 = arith.mulf %42, %43 : vector<2x1xf32>
    %45 = vector.broadcast %44 : vector<2x1xf32> to vector<2x128xf32>
    %46 = arith.subf %40, %45 : vector<2x128xf32>
    %47 = tpu.iota {dimensions = array<i32: 1>} : vector<1x128xi32>
    %c32_i32 = arith.constant 32 : i32
    %48 = vector.broadcast %c32_i32 : i32 to vector<1x128xi32>
    %49 = arith.cmpi slt, %47, %48 : vector<1x128xi32>
    %50 = arith.extui %49 : vector<1x128xi1> to vector<1x128xi32>
    %51 = arith.sitofp %50 : vector<1x128xi32> to vector<1x128xf32>
    %52 = vector.broadcast %51 : vector<1x128xf32> to vector<2x128xf32>
    %53 = arith.mulf %46, %52 : vector<2x128xf32>
    %54 = arith.mulf %53, %53 : vector<2x128xf32>
    %cst_24 = arith.constant dense<0.000000e+00> : vector<2xf32>
    %55 = vector.multi_reduction <add>, %54, %cst_24 [1] : vector<2x128xf32> to vector<2xf32>
    %56 = vector.shape_cast %55 : vector<2xf32> to vector<2x1xf32>
    %cst_25 = arith.constant 3.125000e-02 : f32
    %57 = vector.broadcast %cst_25 : f32 to vector<2x1xf32>
    %58 = arith.mulf %56, %57 : vector<2x1xf32>
    %cst_26 = arith.constant 9.99999974E-6 : f32
    %59 = vector.broadcast %cst_26 : f32 to vector<2x1xf32>
    %60 = arith.addf %58, %59 : vector<2x1xf32>
    %61 = math.rsqrt %60 : vector<2x1xf32>
    %62 = vector.broadcast %61 : vector<2x1xf32> to vector<2x128xf32>
    %63 = arith.mulf %53, %62 : vector<2x128xf32>
    %c0_27 = arith.constant 0 : index
    %c0_28 = arith.constant 0 : index
    %64 = vector.load %arg8[%c0_27, %c0_28] : memref<1x128xf32, #tpu.memory_space<vmem>>, vector<1x128xf32>
    %65 = vector.broadcast %64 : vector<1x128xf32> to vector<2x128xf32>
    %66 = arith.mulf %63, %65 : vector<2x128xf32>
    %c0_29 = arith.constant 0 : index
    %c0_30 = arith.constant 0 : index
    %67 = vector.load %arg9[%c0_29, %c0_30] : memref<1x128xf32, #tpu.memory_space<vmem>>, vector<1x128xf32>
    %68 = vector.broadcast %67 : vector<1x128xf32> to vector<2x128xf32>
    %69 = arith.addf %66, %68 : vector<2x128xf32>
    %c0_31 = arith.constant 0 : index
    %c0_32 = arith.constant 0 : index
    %70 = vector.load %arg10[%c0_31, %c0_32] : memref<2x128xf32, #tpu.memory_space<vmem>>, vector<2x128xf32>
    tpu.vector_store %arg10[%c0_31, %c0_32], %69 {strides = array<i32>} : memref<2x128xf32, #tpu.memory_space<vmem>>, vector<2x128xf32>,
    return
  }
  func.func @transform_0(%arg0: i32) -> (i32, i32, i32) {
    %c0_i32 = arith.constant 0 : i32
    %c0_i32_0 = arith.constant 0 : i32
    %c0_i32_1 = arith.constant 0 : i32
    return %arg0, %c0_i32, %c0_i32_0 : i32, i32, i32
  }
  func.func @transform_1(%arg0: i32) -> (i32, i32) {
    %c0_i32 = arith.constant 0 : i32
    %c0_i32_0 = arith.constant 0 : i32
    return %arg0, %c0_i32 : i32, i32
  }
  func.func @transform_2(%arg0: i32) -> (i32, i32) {
    %c0_i32 = arith.constant 0 : i32
    %c0_i32_0 = arith.constant 0 : i32
    %c0_i32_1 = arith.constant 0 : i32
    return %c0_i32, %c0_i32_0 : i32, i32
  }
  func.func @transform_3(%arg0: i32) -> (i32, i32) {
    %c0_i32 = arith.constant 0 : i32
    %c0_i32_0 = arith.constant 0 : i32
    %c0_i32_1 = arith.constant 0 : i32
    return %c0_i32, %c0_i32_0 : i32, i32
  }
  func.func @transform_4(%arg0: i32) -> (i32, i32) {
    %c0_i32 = arith.constant 0 : i32
    %c0_i32_0 = arith.constant 0 : i32
    %c0_i32_1 = arith.constant 0 : i32
    return %c0_i32, %c0_i32_0 : i32, i32
  }
  func.func @transform_5(%arg0: i32) -> (i32, i32) {
    %c0_i32 = arith.constant 0 : i32
    %c0_i32_0 = arith.constant 0 : i32
    %c0_i32_1 = arith.constant 0 : i32
    return %c0_i32, %c0_i32_0 : i32, i32
  }
  func.func @transform_6(%arg0: i32) -> (i32, i32) {
    %c0_i32 = arith.constant 0 : i32
    %c0_i32_0 = arith.constant 0 : i32
    %c0_i32_1 = arith.constant 0 : i32
    return %c0_i32, %c0_i32_0 : i32, i32
  }
  func.func @transform_7(%arg0: i32) -> (i32, i32) {
    %c0_i32 = arith.constant 0 : i32
    %c0_i32_0 = arith.constant 0 : i32
    %c0_i32_1 = arith.constant 0 : i32
    return %c0_i32, %c0_i32_0 : i32, i32
  }
  func.func @transform_8(%arg0: i32) -> (i32, i32) {
    %c0_i32 = arith.constant 0 : i32
    %c0_i32_0 = arith.constant 0 : i32
    %c0_i32_1 = arith.constant 0 : i32
    return %c0_i32, %c0_i32_0 : i32, i32
  }
  func.func @transform_9(%arg0: i32) -> (i32, i32) {
    %c0_i32 = arith.constant 0 : i32
    %c0_i32_0 = arith.constant 0 : i32
    return %arg0, %c0_i32 : i32, i32
  }
}

</mosaic_0001>

<bundles_post_ra>
// kernel: tpu_custom_call.1
= control target key start
LH: loop header
LB: loop body
LE: loop exit
PB: predicated region body
PF: predicated region fallthrough
CT: control target
= control target key end

     0   :  { %14 = vsyncpa [#allocation3], 0  ;;  %s561_s0 = inlined_call_operand.hbm [shape: f32[2,8,32], index: 0, kind: input, shape index: {}]   ;;  %s562_s1 = inlined_call_operand.hbm [shape: f32[2,8], index: 1, kind: input, shape index: {}]   ;;  %s563_s2 = inlined_call_operand.hbm [shape: f32[32,128], index: 2, kind: input, shape index: {}]   ;;  %s564_s3 = inlined_call_operand.vmem [shape: f32[1,128], index: 3, kind: input, shape index: {}]   ;;  %s565_s4 = inlined_call_operand.vmem [shape: f32[1,128], index: 4, kind: input, shape index: {}]   ;;  %s566_s5 = inlined_call_operand.hbm [shape: f32[32,128], index: 5, kind: input, shape index: {}]   ;;  %s567_s6 = inlined_call_operand.vmem [shape: f32[1,128], index: 6, kind: input, shape index: {}]   ;;  %s568_s7 = inlined_call_operand.vmem [shape: f32[1,128], index: 7, kind: input, shape index: {}]   ;;  %s569_s8 = inlined_call_operand.vmem [shape: f32[1,128], index: 8, kind: input, shape index: {}]   ;;  %s570_s9 = inlined_call_operand.hbm [shape: f32[2,128], index: 9, kind: output, shape index: {}]  }
   0x1   :  { %15 = vsyncpa [#allocation6], 0 }
   0x2   :  { %16 = vsyncpa [#allocation9], 0  ;;  %s36_s11 = sshll.u32 %s562_s1, 4  ;;  %s37_s11 = int_to_ptr.hbm [resolvable:$true] %s36_s11 }
   0x3   :  { %17 = vsyncpa [#allocation4], 0  ;;  %s468_s12 = smov [#allocation5]   ;;  %s22_s16 = sshll.u32 %s561_s0, 4  ;;  %s23_s16 = int_to_ptr.hbm [resolvable:$true] %s22_s16 }
   0x4   :  { %s38_s13 = sshll.u32 %s468_s12, 4  ;;  %s469_s17 = smov [#allocation2]   ;;  %s39_s13 = int_to_ptr.vmem [resolvable:$true] %s38_s13 }
   0x5   :  { %41 = dma.hbm_to_vmem [thread:$0]  %s37_s11, 32, %s39_s13, [#allocation6]  }
   0x6   :  { %s24_s18 = sshll.u32 %s469_s17, 4  ;;  %s470_s19 = smov 128   ;;  %s25_s18 = int_to_ptr.vmem [resolvable:$true] %s24_s18 }
   0x7   :  { %s471_s20 = smov 8   ;;  %s46_s1 = sshll.u32 %s563_s2, 4  ;;  %s47_s1 = int_to_ptr.hbm [resolvable:$true] %s46_s1 }
   0x8   :  { %30 = dma.hbm_to_vmem [thread:$0]  %s23_s16, 256, %s25_s18, [#allocation3], %s470_s19, %s470_s19, %s471_s20  }
   0x9   :  { %s472_s23 = smov [#allocation7]   ;;  %s63_s0 = sshll.u32 %s566_s5, 4  ;;  %s64_s0 = int_to_ptr.hbm [resolvable:$true] %s63_s0 }
   0xa   :  { %s48_s24 = sshll.u32 %s472_s23, 4  ;;  %s473_s27 = smov [#allocation8]   ;;  %s49_s24 = int_to_ptr.vmem [resolvable:$true] %s48_s24 }
   0xb   :  { %54 = dma.hbm_to_vmem [thread:$0]  %s47_s1, 512, %s49_s24, [#allocation6], %s470_s19, %s470_s19, %s471_s20  }
   0xc   :  { %s65_s28 = sshll.u32 %s473_s27, 4  ;;  %s66_s28 = int_to_ptr.vmem [resolvable:$true] %s65_s28 }
   0xd   :  { %71 = dma.hbm_to_vmem [thread:$0]  %s64_s0, 512, %s66_s28, [#allocation9], %s470_s19, %s470_s19, %s471_s20  }
   0xe   :  { %460 = dma.done.wait [#allocation3], 256  }
   0xf   :  { %461 = vsyncadd [#allocation3], 4294967040 }
  0x10   :  { %462 = dma.done.wait [#allocation6], 544  }
  0x11   :  { %463 = vsyncadd [#allocation6], 4294966752 }
  0x12   :  { %464 = dma.done.wait [#allocation9], 512  }
  0x13   :  { %465 = vsyncadd [#allocation9], 4294966784  ;;  %v100_v0 = vld [vmem:[#allocation7 + $0x18] sm:$0xff]  ;;  %v99_v1 = vld [vmem:[#allocation7 + $0x10] sm:$0xff]  ;;  %vm105_vm0 = vcmask 261120   ;;  %v150_v17 = vlaneseq  ;;  %vm154_vm1 = vcmask 1041409  }
  0x14   :  { %124 = vmatpush.msra.mxu0 %v100_v0  ;;  %v94_v2 = vld [vmem:[#allocation2] sm:$0xff]  ;;  %v95_v3 = vld [vmem:[#allocation2 + $0x8] sm:$0xff]  ;;  %v97_v5 = vld [vmem:[#allocation7] sm:$0xff]  ;;  %vm158_vm3 = vcmask 58368   ;;  %vm175_vm4 = vcmask 64512   ;;  %vm254_vm5 = vcmask 1041408  }
  0x15   :  { %v98_v4 = vld [vmem:[#allocation7 + $0x8] sm:$0xff]  ;;  %193 = vmatpush.msra.mxu1 %v94_v2  ;;  %215 = vmatpush.msra.mxu2 %v95_v3  ;;  %v151_v18 = vand.u32 127, %v150_v17  ;;  %v96_v19 = vld [vmem:[#allocation5] sm:$0x3]  ;;  %v222_v39 = vld [vmem:[#allocation8 + $0x10] sm:$0xff]  ;;  %v474_v52 = vmov 0.0  }
  0x16   :  { %125 = vmatpush.msra.mxu0 %v99_v1  ;;  %v325_v6 = vld [vmem:[%s564_s3] ss:$0 sm:$0xff]  ;;  %vm147_vm2 = vcmp.eq.f32.partialorder %v96_v19, 0.0  ;;  %v223_v38 = vld [vmem:[#allocation8 + $0x18] sm:$0xff]  ;;  %v220_v41 = vld [vmem:[#allocation8] sm:$0xff]  ;;  %s475_s13 = smov [#allocation10]  }
  0x17   :  { %v326_v9 = vld [vmem:[%s565_s4] ss:$0 sm:$0xff]  ;;  %246 = vmatpush.msra.mxu3 %v223_v38  ;;  %vm260_vm6 = vcmp.lt.s32.totalorder %v151_v18, 32  ;;  %s297_s14 = sshll.u32 %s475_s13, 4  ;;  %s299_s17 = sshll.u32 %s570_s9, 4  ;;  %s298_s14 = int_to_ptr.vmem [resolvable:$true] %s297_s14  ;;  %s300_s17 = int_to_ptr.hbm [resolvable:$true] %s299_s17 }
  0x18   :  { %126 = vmatpush.msra.mxu0 %v98_v4  ;;  %v221_v40 = vld [vmem:[#allocation8 + $0x8] sm:$0xff]  ;;  %v316_v53 = vsel %vm260_vm6, 1.0, %v474_v52 }
  0x19   :  { %247 = vmatpush.msra.mxu3 %v222_v39  ;;  %v327_v46 = vld [vmem:[%s567_s6] ss:$0 sm:$0xff] }
  0x1a   :  { %127 = vmatpush.msra.mxu0 %v97_v5 }
  0x1b   :  { %311 = vmatmul.msk.f32.vlgmr.msra.gmra.mxu0 %vm105_vm0, %v94_v2  ;;  %248 = vmatpush.msra.mxu3 %v221_v40 }
  0x1d   :  { %249 = vmatpush.msra.mxu3 %v220_v41 }
  0x23   :  { %312 = vmatmul.msk.f32.gmra.mxu0 %vm105_vm0, %v95_v3  ;;  %v328_v3 = vld [vmem:[%s568_s7] ss:$0 sm:$0xff] }
  0x98   :  { %v129_v7 = vpop.f32.mrf.mxu0 }
  0x99   :  { %v130_v8 = vadd.f32 %v325_v6, %v129_v7 }
  0x9b   :  { %330 = vtanh.f32 %v130_v8 }
  0xa0   :  { %v132_v10 = vpop.f32.mrf.mxu0 }
  0xa1   :  { %v331_v11 = vpop.eup %330  ;;  %v133_v12 = vadd.f32 %v325_v6, %v132_v10  ;;  %v329_v6 = vld [vmem:[%s569_s8] ss:$0 sm:$0xff] }
  0xa2   :  { %v141_v13 = vmul.f32 %v331_v11, %v326_v9 }
  0xa3   :  { %332 = vtanh.f32 %v133_v12 }
  0xa4   :  { %143 = vadd.xlane.f32.xlu0 %v141_v13 }
  0xa9   :  { %v333_v14 = vpop.eup %332 }
  0xaa   :  { %v142_v15 = vmul.f32 %v333_v14, %v326_v9 }
  0xac   :  { %145 = vadd.xlane.f32.xlu0 %v142_v15 }
 0x117   :  { %v144_v16 = vpop.xlane.xlu0 %143 }
 0x118   :  { %v152_v21 = vperm.slane %v144_v16, %v151_v18 }
 0x11f   :  { %v146_v20 = vpop.xlane.xlu0 %145 }
 0x120   :  { %v153_v22 = vperm.slane %v146_v20, %v151_v18 }
 0x122   :  { %v155_v23 = vsel %vm154_vm1, %v153_v22, %v152_v21 }
 0x123   :  { %v157_v24 = vsel %vm147_vm2, -1e+09, %v155_v23 }
 0x124   :  { %v159_v25 = vsel %vm158_vm3, %v157_v24, -inf }
 0x125   :  { %160 = vmax.xlane.f32.xlu1 %v159_v25 }
 0x198   :  { %v161_v26 = vpop.xlane.xlu1 %160 }
 0x199   :  { %v162_v27 = vsub.f32 %v157_v24, %v161_v26 }
 0x19b   :  { %v163_v28 = vmul.f32 1.442695, %v162_v27 }
 0x19d   :  { %334 = vpow2.f32 %v163_v28 }
 0x1a3   :  { %v335_v29 = vpop.eup %334 }
 0x1a4   :  { %v165_v30 = vsel %vm158_vm3, %v335_v29, 0.0 }
 0x1a5   :  { %166 = vadd.xlane.f32.xlu1 %v165_v30 }
 0x218   :  { %v167_v31 = vpop.xlane.xlu1 %166 }
 0x219   :  { %336 = vrcp.f32 %v167_v31 }
 0x21f   :  { %v337_v32 = vpop.eup %336 }
 0x220   :  { %v169_v33 = vmul.f32 %v337_v32, %v167_v31 }
 0x222   :  { %v170_v34 = vsub.f32 2.0, %v169_v33 }
 0x224   :  { %v171_v35 = vmul.f32 %v337_v32, %v170_v34 }
 0x226   :  { %v172_v36 = vmul.f32 %v335_v29, %v171_v35 }
 0x228   :  { %313 = vmatmul.msk.f32.vlgmr.msra.gmra.mxu1 %vm175_vm4, %v172_v36  ;;  %v174_v37 = vrot.slane %v172_v36, 1 }
 0x22a   :  { %314 = vmatmul.msk.f32.vlgmr.msra.gmra.mxu2 %vm175_vm4, %v174_v37 }
 0x2a5   :  { %v195_v44 = vpop.f32.mrf.mxu1 }
 0x2ad   :  { %v217_v42 = vpop.f32.mrf.mxu2 }
 0x2ae   :  { %v230_v43 = vrot.slane %v217_v42, 7 }
 0x2b0   :  { %v231_v45 = vsel %vm154_vm1, %v230_v43, %v195_v44 }
 0x2b1   :  { %315 = vmatmul.msk.f32.vlgmr.msra.gmra.mxu3 %vm105_vm0, %v231_v45 }
 0x334   :  { %v251_v47 = vpop.f32.mrf.mxu3 }
 0x335   :  { %v252_v48 = vadd.f32 %v327_v46, %v251_v47 }
 0x337   :  { %v255_v49 = vsel %vm254_vm5, %v252_v48, 0.0 }
 0x338   :  { %256 = vadd.xlane.f32.xlu2 %v255_v49 }
 0x3ab   :  { %v257_v50 = vpop.xlane.xlu2 %256 }
 0x3ac   :  { %v258_v51 = vmul.f32 0.03125, %v257_v50 }
 0x3ae   :  { %v259_v54 = vsub.f32 %v252_v48, %v258_v51 }
 0x3b0   :  { %v263_v55 = vmul.f32 %v316_v53, %v259_v54 }
 0x3b2   :  { %v264_v56 = vmul.f32 %v263_v55, %v263_v55 }
 0x3b4   :  { %v265_v57 = vsel %vm254_vm5, %v264_v56, 0.0 }
 0x3b5   :  { %266 = vadd.xlane.f32.xlu2 %v265_v57 }
 0x428   :  { %v267_v58 = vpop.xlane.xlu2 %266 }
 0x429   :  { %v268_v59 = vmul.f32 0.03125, %v267_v58 }
 0x42b   :  { %v269_v60 = vadd.f32 1e-05, %v268_v59 }
 0x42d   :  { %338 = vrsqrt.f32 %v269_v60  ;;  %vm276_vm8 = vweird.f32 %v269_v60 }
 0x433   :  { %v339_v61 = vpop.eup %338 }
 0x434   :  { %v271_v62 = vmul.f32 %v339_v61, %v269_v60  ;;  %vm277_vm7 = vweird.f32 %v339_v61 }
 0x435   :  { %vm278_vm9 = vmor %vm276_vm8, %vm277_vm7 }
 0x436   :  { %v272_v63 = vmul.f32 %v339_v61, %v271_v62 }
 0x438   :  { %v273_v0 = vmul.f32 0.5, %v272_v63 }
 0x43a   :  { %v274_v1 = vsub.f32 1.5, %v273_v0 }
 0x43c   :  { %v275_v2 = vmul.f32 %v339_v61, %v274_v1 }
 0x43e   :  { %v279_v4 = vsel %vm278_vm9, %v339_v61, %v275_v2 }
 0x43f   :  { %v280_v5 = vmul.f32 %v279_v4, %v263_v55 }
 0x441   :  { %v285_v7 = vmul.f32 %v328_v3, %v280_v5 }
 0x443   :  { %v290_v8 = vadd.f32 %v329_v6, %v285_v7 }
 0x445   :  { %291 = vst [vmem:[#allocation10] sm:$0x3] %v290_v8 }
 0x446   :  { %302 = dma.vmem_to_hbm [thread:$0]  %s298_s14, 32, %s300_s17, [#allocation4]  }
 0x447   :  { %466 = dma.done.wait [#allocation4], 32  }
 0x448   :  { %467 = vsyncadd [#allocation4], 4294967264 }
 0x449   :  { %307 = vsyncpa [#allocation3], 1 }
 0x44a   :  { %308 = vsyncpa [#allocation6], 1 }
 0x44b   :  { %309 = vsyncpa [#allocation9], 1 }
 0x44c   :  { %310 = vsyncpa [#allocation4], 1 }

// kernel: tpu_custom_call.1
= control target key start
LH: loop header
LB: loop body
LE: loop exit
PB: predicated region body
PF: predicated region fallthrough
CT: control target
= control target key end

     0   :  { %14 = vsyncpa [#allocation3], 0  ;;  %s561_s0 = inlined_call_operand.hbm [shape: f32[2,8,32], index: 0, kind: input, shape index: {}]   ;;  %s562_s1 = inlined_call_operand.hbm [shape: f32[2,8], index: 1, kind: input, shape index: {}]   ;;  %s563_s2 = inlined_call_operand.hbm [shape: f32[32,128], index: 2, kind: input, shape index: {}]   ;;  %s564_s3 = inlined_call_operand.vmem [shape: f32[1,128], index: 3, kind: input, shape index: {}]   ;;  %s565_s4 = inlined_call_operand.vmem [shape: f32[1,128], index: 4, kind: input, shape index: {}]   ;;  %s566_s5 = inlined_call_operand.hbm [shape: f32[32,128], index: 5, kind: input, shape index: {}]   ;;  %s567_s6 = inlined_call_operand.vmem [shape: f32[1,128], index: 6, kind: input, shape index: {}]   ;;  %s568_s7 = inlined_call_operand.vmem [shape: f32[1,128], index: 7, kind: input, shape index: {}]   ;;  %s569_s8 = inlined_call_operand.vmem [shape: f32[1,128], index: 8, kind: input, shape index: {}]   ;;  %s570_s9 = inlined_call_operand.hbm [shape: f32[2,128], index: 9, kind: output, shape index: {}]  }
   0x1   :  { %15 = vsyncpa [#allocation6], 0 }
   0x2   :  { %16 = vsyncpa [#allocation9], 0  ;;  %s36_s11 = sshll.u32 %s562_s1, 4  ;;  %s37_s11 = int_to_ptr.hbm [resolvable:$true] %s36_s11 }
   0x3   :  { %17 = vsyncpa [#allocation4], 0  ;;  %s468_s12 = smov [#allocation5]   ;;  %s22_s16 = sshll.u32 %s561_s0, 4  ;;  %s23_s16 = int_to_ptr.hbm [resolvable:$true] %s22_s16 }
   0x4   :  { %s38_s13 = sshll.u32 %s468_s12, 4  ;;  %s469_s17 = smov [#allocation2]   ;;  %s39_s13 = int_to_ptr.vmem [resolvable:$true] %s38_s13 }
   0x5   :  { %41 = dma.hbm_to_vmem [thread:$0]  %s37_s11, 32, %s39_s13, [#allocation6]  }
   0x6   :  { %s24_s18 = sshll.u32 %s469_s17, 4  ;;  %s470_s19 = smov 128   ;;  %s25_s18 = int_to_ptr.vmem [resolvable:$true] %s24_s18 }
   0x7   :  { %s471_s20 = smov 8   ;;  %s46_s1 = sshll.u32 %s563_s2, 4  ;;  %s47_s1 = int_to_ptr.hbm [resolvable:$true] %s46_s1 }
   0x8   :  { %30 = dma.hbm_to_vmem [thread:$0]  %s23_s16, 256, %s25_s18, [#allocation3], %s470_s19, %s470_s19, %s471_s20  }
   0x9   :  { %s472_s23 = smov [#allocation7]   ;;  %s63_s0 = sshll.u32 %s566_s5, 4  ;;  %s64_s0 = int_to_ptr.hbm [resolvable:$true] %s63_s0 }
   0xa   :  { %s48_s24 = sshll.u32 %s472_s23, 4  ;;  %s473_s27 = smov [#allocation8]   ;;  %s49_s24 = int_to_ptr.vmem [resolvable:$true] %s48_s24 }
   0xb   :  { %54 = dma.hbm_to_vmem [thread:$0]  %s47_s1, 512, %s49_s24, [#allocation6], %s470_s19, %s470_s19, %s471_s20  }
   0xc   :  { %s65_s28 = sshll.u32 %s473_s27, 4  ;;  %s66_s28 = int_to_ptr.vmem [resolvable:$true] %s65_s28 }
   0xd   :  { %71 = dma.hbm_to_vmem [thread:$0]  %s64_s0, 512, %s66_s28, [#allocation9], %s470_s19, %s470_s19, %s471_s20  }
   0xe   :  { %460 = dma.done.wait [#allocation3], 256  }
   0xf   :  { %461 = vsyncadd [#allocation3], 4294967040 }
  0x10   :  { %462 = dma.done.wait [#allocation6], 544  }
  0x11   :  { %463 = vsyncadd [#allocation6], 4294966752 }
  0x12   :  { %464 = dma.done.wait [#allocation9], 512  }
  0x13   :  { %465 = vsyncadd [#allocation9], 4294966784  ;;  %v100_v0 = vld [vmem:[#allocation7 + $0x18] sm:$0xff]  ;;  %v99_v1 = vld [vmem:[#allocation7 + $0x10] sm:$0xff]  ;;  %vm105_vm0 = vcmask 261120   ;;  %v150_v17 = vlaneseq  ;;  %vm154_vm1 = vcmask 1041409  }
  0x14   :  { %124 = vmatpush.msra.mxu0 %v100_v0  ;;  %v94_v2 = vld [vmem:[#allocation2] sm:$0xff]  ;;  %v95_v3 = vld [vmem:[#allocation2 + $0x8] sm:$0xff]  ;;  %v97_v5 = vld [vmem:[#allocation7] sm:$0xff]  ;;  %vm158_vm3 = vcmask 58368   ;;  %vm175_vm4 = vcmask 64512   ;;  %vm254_vm5 = vcmask 1041408  }
  0x15   :  { %v98_v4 = vld [vmem:[#allocation7 + $0x8] sm:$0xff]  ;;  %193 = vmatpush.msra.mxu1 %v94_v2  ;;  %215 = vmatpush.msra.mxu2 %v95_v3  ;;  %v151_v18 = vand.u32 127, %v150_v17  ;;  %v96_v19 = vld [vmem:[#allocation5] sm:$0x3]  ;;  %v222_v39 = vld [vmem:[#allocation8 + $0x10] sm:$0xff]  ;;  %v474_v52 = vmov 0.0  }
  0x16   :  { %125 = vmatpush.msra.mxu0 %v99_v1  ;;  %v325_v6 = vld [vmem:[%s564_s3] ss:$0 sm:$0xff]  ;;  %vm147_vm2 = vcmp.eq.f32.partialorder %v96_v19, 0.0  ;;  %v223_v38 = vld [vmem:[#allocation8 + $0x18] sm:$0xff]  ;;  %v220_v41 = vld [vmem:[#allocation8] sm:$0xff]  ;;  %s475_s13 = smov [#allocation10]  }
  0x17   :  { %v326_v9 = vld [vmem:[%s565_s4] ss:$0 sm:$0xff]  ;;  %246 = vmatpush.msra.mxu3 %v223_v38  ;;  %vm260_vm6 = vcmp.lt.s32.totalorder %v151_v18, 32  ;;  %s297_s14 = sshll.u32 %s475_s13, 4  ;;  %s299_s17 = sshll.u32 %s570_s9, 4  ;;  %s298_s14 = int_to_ptr.vmem [resolvable:$true] %s297_s14  ;;  %s300_s17 = int_to_ptr.hbm [resolvable:$true] %s299_s17 }
  0x18   :  { %126 = vmatpush.msra.mxu0 %v98_v4  ;;  %v221_v40 = vld [vmem:[#allocation8 + $0x8] sm:$0xff]  ;;  %v316_v53 = vsel %vm260_vm6, 1.0, %v474_v52 }
  0x19   :  { %247 = vmatpush.msra.mxu3 %v222_v39  ;;  %v327_v46 = vld [vmem:[%s567_s6] ss:$0 sm:$0xff] }
  0x1a   :  { %127 = vmatpush.msra.mxu0 %v97_v5 }
  0x1b   :  { %311 = vmatmul.msk.f32.vlgmr.msra.gmra.mxu0 %vm105_vm0, %v94_v2  ;;  %248 = vmatpush.msra.mxu3 %v221_v40 }
  0x1d   :  { %249 = vmatpush.msra.mxu3 %v220_v41 }
  0x23   :  { %312 = vmatmul.msk.f32.gmra.mxu0 %vm105_vm0, %v95_v3  ;;  %v328_v3 = vld [vmem:[%s568_s7] ss:$0 sm:$0xff] }
  0x98   :  { %v129_v7 = vpop.f32.mrf.mxu0 }
  0x99   :  { %v130_v8 = vadd.f32 %v325_v6, %v129_v7 }
  0x9b   :  { %330 = vtanh.f32 %v130_v8 }
  0xa0   :  { %v132_v10 = vpop.f32.mrf.mxu0 }
  0xa1   :  { %v331_v11 = vpop.eup %330  ;;  %v133_v12 = vadd.f32 %v325_v6, %v132_v10  ;;  %v329_v6 = vld [vmem:[%s569_s8] ss:$0 sm:$0xff] }
  0xa2   :  { %v141_v13 = vmul.f32 %v331_v11, %v326_v9 }
  0xa3   :  { %332 = vtanh.f32 %v133_v12 }
  0xa4   :  { %143 = vadd.xlane.f32.xlu0 %v141_v13 }
  0xa9   :  { %v333_v14 = vpop.eup %332 }
  0xaa   :  { %v142_v15 = vmul.f32 %v333_v14, %v326_v9 }
  0xac   :  { %145 = vadd.xlane.f32.xlu0 %v142_v15 }
 0x117   :  { %v144_v16 = vpop.xlane.xlu0 %143 }
 0x118   :  { %v152_v21 = vperm.slane %v144_v16, %v151_v18 }
 0x11f   :  { %v146_v20 = vpop.xlane.xlu0 %145 }
 0x120   :  { %v153_v22 = vperm.slane %v146_v20, %v151_v18 }
 0x122   :  { %v155_v23 = vsel %vm154_vm1, %v153_v22, %v152_v21 }
 0x123   :  { %v157_v24 = vsel %vm147_vm2, -1e+09, %v155_v23 }
 0x124   :  { %v159_v25 = vsel %vm158_vm3, %v157_v24, -inf }
 0x125   :  { %160 = vmax.xlane.f32.xlu1 %v159_v25 }
 0x198   :  { %v161_v26 = vpop.xlane.xlu1 %160 }
 0x199   :  { %v162_v27 = vsub.f32 %v157_v24, %v161_v26 }
 0x19b   :  { %v163_v28 = vmul.f32 1.442695, %v162_v27 }
 0x19d   :  { %334 = vpow2.f32 %v163_v28 }
 0x1a3   :  { %v335_v29 = vpop.eup %334 }
 0x1a4   :  { %v165_v30 = vsel %vm158_vm3, %v335_v29, 0.0 }
 0x1a5   :  { %166 = vadd.xlane.f32.xlu1 %v165_v30 }
 0x218   :  { %v167_v31 = vpop.xlane.xlu1 %166 }
 0x219   :  { %336 = vrcp.f32 %v167_v31 }
 0x21f   :  { %v337_v32 = vpop.eup %336 }
 0x220   :  { %v169_v33 = vmul.f32 %v337_v32, %v167_v31 }
 0x222   :  { %v170_v34 = vsub.f32 2.0, %v169_v33 }
 0x224   :  { %v171_v35 = vmul.f32 %v337_v32, %v170_v34 }
 0x226   :  { %v172_v36 = vmul.f32 %v335_v29, %v171_v35 }
 0x228   :  { %313 = vmatmul.msk.f32.vlgmr.msra.gmra.mxu1 %vm175_vm4, %v172_v36  ;;  %v174_v37 = vrot.slane %v172_v36, 1 }
 0x22a   :  { %314 = vmatmul.msk.f32.vlgmr.msra.gmra.mxu2 %vm175_vm4, %v174_v37 }
 0x2a5   :  { %v195_v44 = vpop.f32.mrf.mxu1 }
 0x2ad   :  { %v217_v42 = vpop.f32.mrf.mxu2 }
 0x2ae   :  { %v230_v43 = vrot.slane %v217_v42, 7 }
 0x2b0   :  { %v231_v45 = vsel %vm154_vm1, %v230_v43, %v195_v44 }
 0x2b1   :  { %315 = vmatmul.msk.f32.vlgmr.msra.gmra.mxu3 %vm105_vm0, %v231_v45 }
 0x334   :  { %v251_v47 = vpop.f32.mrf.mxu3 }
 0x335   :  { %v252_v48 = vadd.f32 %v327_v46, %v251_v47 }
 0x337   :  { %v255_v49 = vsel %vm254_vm5, %v252_v48, 0.0 }
 0x338   :  { %256 = vadd.xlane.f32.xlu2 %v255_v49 }
 0x3ab   :  { %v257_v50 = vpop.xlane.xlu2 %256 }
 0x3ac   :  { %v258_v51 = vmul.f32 0.03125, %v257_v50 }
 0x3ae   :  { %v259_v54 = vsub.f32 %v252_v48, %v258_v51 }
 0x3b0   :  { %v263_v55 = vmul.f32 %v316_v53, %v259_v54 }
 0x3b2   :  { %v264_v56 = vmul.f32 %v263_v55, %v263_v55 }
 0x3b4   :  { %v265_v57 = vsel %vm254_vm5, %v264_v56, 0.0 }
 0x3b5   :  { %266 = vadd.xlane.f32.xlu2 %v265_v57 }
 0x428   :  { %v267_v58 = vpop.xlane.xlu2 %266 }
 0x429   :  { %v268_v59 = vmul.f32 0.03125, %v267_v58 }
 0x42b   :  { %v269_v60 = vadd.f32 1e-05, %v268_v59 }
 0x42d   :  { %338 = vrsqrt.f32 %v269_v60  ;;  %vm276_vm8 = vweird.f32 %v269_v60 }
 0x433   :  { %v339_v61 = vpop.eup %338 }
 0x434   :  { %v271_v62 = vmul.f32 %v339_v61, %v269_v60  ;;  %vm277_vm7 = vweird.f32 %v339_v61 }
 0x435   :  { %vm278_vm9 = vmor %vm276_vm8, %vm277_vm7 }
 0x436   :  { %v272_v63 = vmul.f32 %v339_v61, %v271_v62 }
 0x438   :  { %v273_v0 = vmul.f32 0.5, %v272_v63 }
 0x43a   :  { %v274_v1 = vsub.f32 1.5, %v273_v0 }
 0x43c   :  { %v275_v2 = vmul.f32 %v339_v61, %v274_v1 }
 0x43e   :  { %v279_v4 = vsel %vm278_vm9, %v339_v61, %v275_v2 }
 0x43f   :  { %v280_v5 = vmul.f32 %v279_v4, %v263_v55 }
 0x441   :  { %v285_v7 = vmul.f32 %v328_v3, %v280_v5 }
 0x443   :  { %v290_v8 = vadd.f32 %v329_v6, %v285_v7 }
 0x445   :  { %291 = vst [vmem:[#allocation10] sm:$0x3] %v290_v8 }
 0x446   :  { %302 = dma.vmem_to_hbm [thread:$0]  %s298_s14, 32, %s300_s17, [#allocation4]  }
 0x447   :  { %466 = dma.done.wait [#allocation4], 32  }
 0x448   :  { %467 = vsyncadd [#allocation4], 4294967264 }
 0x449   :  { %307 = vsyncpa [#allocation3], 1 }
 0x44a   :  { %308 = vsyncpa [#allocation6], 1 }
 0x44b   :  { %309 = vsyncpa [#allocation9], 1 }
 0x44c   :  { %310 = vsyncpa [#allocation4], 1 }

</bundles_post_ra>
